<compile_context>
chip_gen: v6e
topology: v6e:2x2x1
jax: 0.10.0
libtpu: 0.0.40
codegen_flags: <defaults>
</compile_context>

<pallas_src>
import math

import jax
import jax.numpy as jnp
from jax.experimental import pallas as pl
from jax.experimental.pallas import tpu as pltpu

LANE = 128
SUBLANE = 8


def chatnn_kernel(x_ref, w0_ref, b0_ref, w1_ref, b1_ref, w2_ref, b2_ref, o_ref):
    """Whole ChatNN forward for one batch tile (all operands fit comfortably in VMEM)."""
    tile_b, in_size = x_ref.shape
    in_pad = w0_ref.shape[0]

    # x arrives unpadded (f32, in_size lanes); cast + lane-pad to 128 in VMEM so the first
    # matmul keeps the full (tile_b, 128) x (128, 128) shape.  The zero pad is exact: padded
    # input columns multiply zero rows of W0.
    x = x_ref[...].astype(jnp.bfloat16)
    if in_pad > in_size:
        x = jnp.concatenate(
            [x, jnp.zeros((tile_b, in_pad - in_size), jnp.bfloat16)], axis=-1
        )

    # linear0 + relu.  Bias refs are (1, N): the add is a cheap sublane-broadcast; no
    # materialized (tile_b, N) broadcast is kept live.
    h = jnp.dot(x, w0_ref[...], preferred_element_type=jnp.float32) + b0_ref[...]
    h = jnp.maximum(h, 0.0)

    # linear1 applied 3x with SHARED weights (exactly as in the PyTorch forward), relu after
    # each.  W1/b1 are read once and reused across the unrolled iterations.
    w1 = w1_ref[...]
    b1 = b1_ref[...]
    for _ in range(3):
        h = jnp.dot(h.astype(w1.dtype), w1, preferred_element_type=jnp.float32) + b1
        h = jnp.maximum(h, 0.0)

    # linear2: matmul at padded N=128 (MXU has huge slack here), then store only the real
    # output columns -> small contiguous writeback instead of a 128-lane padded f32 store.
    res = jnp.dot(h.astype(jnp.bfloat16), w2_ref[...], preferred_element_type=jnp.float32)
    res = res + b2_ref[...]
    o_ref[...] = res[:, : o_ref.shape[-1]].astype(o_ref.dtype)


def _round_up(n, m):
    return ((n + m - 1) // m) * m


def _pad2(a, rows, cols, dtype):
    out = jnp.zeros((rows, cols), dtype)
    return out.at[: a.shape[0], : a.shape[1]].set(a.astype(dtype))


def prepare_params(params):
    """Pad + cast the weights/biases ONCE (at param-load time, not per forward call).

    Zero padding is exact ONLY because: padded input columns hit zero weight rows, padded
    hidden lanes get zero weights AND zero bias (so ReLU(0)=0 keeps them zero through the
    shared-weight loop), and padded output lanes are never stored by the kernel.  If the
    activation or padding scheme changes, revisit this.
    """
    w0, b0, w1, b1, w2, b2 = params
    input_size, hidden_size = w0.shape
    output_size = w2.shape[1]

    in_p = _round_up(input_size, LANE)
    hid_p = _round_up(hidden_size, LANE)
    out_p = _round_up(output_size, LANE)

    return {
        "w0": _pad2(w0, in_p, hid_p, jnp.bfloat16),
        "b0": _pad2(b0, 1, hid_p, jnp.float32),
        "w1": _pad2(w1, hid_p, hid_p, jnp.bfloat16),
        "b1": _pad2(b1, 1, hid_p, jnp.float32),
        "w2": _pad2(w2, hid_p, out_p, jnp.bfloat16),
        "b2": _pad2(b2, 1, out_p, jnp.float32),
        "input_size": input_size,
        "output_size": output_size,
    }


def chatnn_forward(x, prepared, *, tile_b_max=1024):
    """Single pallas_call; only batch-row padding (if needed) happens in the wrapper."""
    batch, input_size = x.shape
    assert input_size == prepared["input_size"]
    output_size = prepared["output_size"]

    w0_p, b0_p = prepared["w0"], prepared["b0"]
    w1_p, b1_p = prepared["w1"], prepared["b1"]
    w2_p, b2_p = prepared["w2"], prepared["b2"]
    in_p, hid_p = w0_p.shape
    out_p = w2_p.shape[1]

    # Batch tiling: sublane-aligned, up to tile_b_max rows per grid step (fewer ~0.35 us grid
    # steps; VMEM use stays around 1 MiB even at 1024 rows).
    tile_b = min(tile_b_max, _round_up(batch, SUBLANE))
    # For mid-size batches make sure there are >= 2 grid steps so the "parallel" batch axis can
    # shard across v7x's two TensorCores (no-op on single-TC v5e/v6e).
    if batch >= 128 and _round_up(batch, tile_b) // tile_b < 2:
        tile_b = _round_up((batch + 1) // 2, SUBLANE)
    b_pad = _round_up(batch, tile_b)
    grid_b = b_pad // tile_b

    x_in = x
    if b_pad > batch:
        x_in = jnp.pad(x, ((0, b_pad - batch), (0, 0)))

    out = pl.pallas_call(
        chatnn_kernel,
        out_shape=jax.ShapeDtypeStruct((b_pad, output_size), jnp.float32),
        grid=(grid_b,),
        in_specs=[
            # x: tiled over batch, UNPADDED last dim (legal: block dim == full array dim).
            pl.BlockSpec((tile_b, input_size), lambda i: (i, 0)),
            pl.BlockSpec((in_p, hid_p), lambda i: (0, 0)),    # W0: VMEM-resident
            pl.BlockSpec((1, hid_p), lambda i: (0, 0)),       # b0
            pl.BlockSpec((hid_p, hid_p), lambda i: (0, 0)),   # W1 (shared 3x)
            pl.BlockSpec((1, hid_p), lambda i: (0, 0)),       # b1
            pl.BlockSpec((hid_p, out_p), lambda i: (0, 0)),   # W2
            pl.BlockSpec((1, out_p), lambda i: (0, 0)),       # b2
        ],
        # Output: UNPADDED columns -> ~16x less writeback than a 128-lane padded f32 store,
        # and no wrapper column-slice pass afterwards.
        out_specs=pl.BlockSpec((tile_b, output_size), lambda i: (i, 0)),
        compiler_params=pltpu.CompilerParams(
            # Batch axis is embarrassingly parallel; lets v7x shard it across its 2 TCs.
            # TODO(synk): if v7x codegen does not dual-core shard with plain "parallel",
            # switch to pltpu.CORE_PARALLEL on a leading size-2 grid axis.
            dimension_semantics=("parallel",),
        ),
    )(x_in, w0_p, b0_p, w1_p, b1_p, w2_p, b2_p)

    return out if b_pad == batch else out[:batch]


def init_params(key, input_size, hidden_size, output_size):
    """Deterministic init mimicking nn.Linear's default uniform(-1/sqrt(fan_in), +...).

    Weights stored as [in, out] (transposed relative to PyTorch's [out, in]); biases [1, out].
    """
    k0, k1, k2, k3, k4, k5 = jax.random.split(key, 6)

    def uni(k, shape, fan_in):
        bound = 1.0 / math.sqrt(fan_in)
        return jax.random.uniform(k, shape, jnp.float32, -bound, bound)

    w0 = uni(k0, (input_size, hidden_size), input_size)
    b0 = uni(k1, (1, hidden_size), input_size)
    w1 = uni(k2, (hidden_size, hidden_size), hidden_size)
    b1 = uni(k3, (1, hidden_size), hidden_size)
    w2 = uni(k4, (hidden_size, output_size), hidden_size)
    b2 = uni(k5, (1, output_size), hidden_size)
    return (w0, b0, w1, b1, w2, b2)


def chatnn_ref_f32(x, params):
    """Pure-JAX f32 reference (semantic check)."""
    w0, b0, w1, b1, w2, b2 = params
    h = jnp.maximum(x @ w0 + b0, 0.0)
    for _ in range(3):
        h = jnp.maximum(h @ w1 + b1, 0.0)
    return h @ w2 + b2


def chatnn_ref_bf16(x, params):
    """Pure-JAX reference with the same bf16-input / f32-accumulate numerics as the kernel."""
    w0, b0, w1, b1, w2, b2 = params
    bf = jnp.bfloat16
    h = jnp.dot(x.astype(bf), w0.astype(bf), preferred_element_type=jnp.float32) + b0
    h = jnp.maximum(h, 0.0)
    for _ in range(3):
        h = jnp.dot(h.astype(bf), w1.astype(bf), preferred_element_type=jnp.float32) + b1
        h = jnp.maximum(h, 0.0)
    return jnp.dot(h.astype(bf), w2.astype(bf), preferred_element_type=jnp.float32) + b2


if __name__ == "__main__":
    # Small shapes consistent with the chatbot MLP: bag-of-words input -> hidden -> tags.
    batch = 8
    input_size = 16
    hidden_size = 32
    output_size = 8

    key = jax.random.PRNGKey(0)
    kx, kp = jax.random.split(key)

    x = jax.random.normal(kx, (batch, input_size), dtype=jnp.float32)
    params = init_params(kp, input_size, hidden_size, output_size)
    prepared = prepare_params(params)  # one-time pad/cast, outside the forward hot path

    out = chatnn_forward(x, prepared)
    out = jax.block_until_ready(out)
    assert out.shape == (batch, output_size)

    # Tight check against a reference with matching bf16-operand / f32-accumulate numerics.
    ref_bf16 = chatnn_ref_bf16(x, params)
    assert jnp.allclose(out, ref_bf16, atol=1e-3, rtol=1e-3), "mismatch vs. bf16 reference"

    # Loose sanity check against the full-f32 reference (bf16 rounding of inputs/activations).
    ref_f32 = chatnn_ref_f32(x, params)
    assert jnp.allclose(out, ref_f32, atol=5e-2, rtol=5e-2), "mismatch vs. f32 reference"

    print("KERNEL_OK")
</pallas_src>

<mosaic_0001>
module attributes {stable_mosaic.version = 11 : i64} {
  func.func @chatnn_kernel(%arg0: i32, %arg1: memref<8x16xf32, #tpu.memory_space<vmem>>, %arg2: memref<128x128xbf16, #tpu.memory_space<vmem>>, %arg3: memref<1x128xf32, #tpu.memory_space<vmem>>, %arg4: memref<128x128xbf16, #tpu.memory_space<vmem>>, %arg5: memref<1x128xf32, #tpu.memory_space<vmem>>, %arg6: memref<128x128xbf16, #tpu.memory_space<vmem>>, %arg7: memref<1x128xf32, #tpu.memory_space<vmem>>, %arg8: memref<8x8xf32, #tpu.memory_space<vmem>>) attributes {dimension_semantics = [#tpu.dimension_semantics<parallel>], iteration_bounds = array<i64: 1>, scalar_prefetch = 0 : i64, scratch_operands = 0 : i64, tpu.core_type = #tpu.core_type<tc>, window_params = [{transform_indices = @transform_0, window_bounds = array<i64: 8, 16>}, {pipeline_mode = #tpu.pipeline_mode<synchronous>, transform_indices = @transform_1, window_bounds = array<i64: 128, 128>}, {pipeline_mode = #tpu.pipeline_mode<synchronous>, transform_indices = @transform_2, window_bounds = array<i64: 1, 128>}, {pipeline_mode = #tpu.pipeline_mode<synchronous>, transform_indices = @transform_3, window_bounds = array<i64: 128, 128>}, {pipeline_mode = #tpu.pipeline_mode<synchronous>, transform_indices = @transform_4, window_bounds = array<i64: 1, 128>}, {pipeline_mode = #tpu.pipeline_mode<synchronous>, transform_indices = @transform_5, window_bounds = array<i64: 128, 128>}, {pipeline_mode = #tpu.pipeline_mode<synchronous>, transform_indices = @transform_6, window_bounds = array<i64: 1, 128>}, {transform_indices = @transform_7, window_bounds = array<i64: 8, 8>}]} {
    %c0 = arith.constant 0 : index
    %c0_0 = arith.constant 0 : index
    %0 = vector.load %arg1[%c0, %c0_0] : memref<8x16xf32, #tpu.memory_space<vmem>>, vector<8x16xf32>
    %1 = arith.truncf %0 : vector<8x16xf32> to vector<8x16xbf16>
    %cst = arith.constant 0.000000e+00 : bf16
    %2 = vector.broadcast %cst : bf16 to vector<8x112xbf16>
    %3 = tpu.concatenate %1, %2 in 1 : vector<8x16xbf16>, vector<8x112xbf16> -> vector<8x128xbf16>
    %c0_1 = arith.constant 0 : index
    %c0_2 = arith.constant 0 : index
    %4 = vector.load %arg2[%c0_1, %c0_2] : memref<128x128xbf16, #tpu.memory_space<vmem>>, vector<128x128xbf16>
    %cst_3 = arith.constant dense<0.000000e+00> : vector<8x128xf32>
    %5 = tpu.matmul %3, %4, %cst_3 {dimension_numbers = #tpu.dot_dimension_numbers<[1], [0], [0], [1], [0, 0, 1, 1], [], []>} : vector<8x128xbf16>, vector<128x128xbf16>, vector<8x128xf32> -> vector<8x128xf32>
    %c0_4 = arith.constant 0 : index
    %c0_5 = arith.constant 0 : index
    %6 = vector.load %arg3[%c0_4, %c0_5] : memref<1x128xf32, #tpu.memory_space<vmem>>, vector<1x128xf32>
    %7 = vector.broadcast %6 : vector<1x128xf32> to vector<8x128xf32>
    %8 = arith.addf %5, %7 : vector<8x128xf32>
    %cst_6 = arith.constant 0.000000e+00 : f32
    %9 = vector.broadcast %cst_6 : f32 to vector<8x128xf32>
    %10 = arith.maximumf %8, %9 : vector<8x128xf32>
    %c0_7 = arith.constant 0 : index
    %c0_8 = arith.constant 0 : index
    %11 = vector.load %arg4[%c0_7, %c0_8] : memref<128x128xbf16, #tpu.memory_space<vmem>>, vector<128x128xbf16>
    %c0_9 = arith.constant 0 : index
    %c0_10 = arith.constant 0 : index
    %12 = vector.load %arg5[%c0_9, %c0_10] : memref<1x128xf32, #tpu.memory_space<vmem>>, vector<1x128xf32>
    %13 = arith.truncf %10 : vector<8x128xf32> to vector<8x128xbf16>
    %cst_11 = arith.constant dense<0.000000e+00> : vector<8x128xf32>
    %14 = tpu.matmul %13, %11, %cst_11 {dimension_numbers = #tpu.dot_dimension_numbers<[1], [0], [0], [1], [0, 0, 1, 1], [], []>} : vector<8x128xbf16>, vector<128x128xbf16>, vector<8x128xf32> -> vector<8x128xf32>
    %15 = vector.broadcast %12 : vector<1x128xf32> to vector<8x128xf32>
    %16 = arith.addf %14, %15 : vector<8x128xf32>
    %cst_12 = arith.constant 0.000000e+00 : f32
    %17 = vector.broadcast %cst_12 : f32 to vector<8x128xf32>
    %18 = arith.maximumf %16, %17 : vector<8x128xf32>
    %19 = arith.truncf %18 : vector<8x128xf32> to vector<8x128xbf16>
    %cst_13 = arith.constant dense<0.000000e+00> : vector<8x128xf32>
    %20 = tpu.matmul %19, %11, %cst_13 {dimension_numbers = #tpu.dot_dimension_numbers<[1], [0], [0], [1], [0, 0, 1, 1], [], []>} : vector<8x128xbf16>, vector<128x128xbf16>, vector<8x128xf32> -> vector<8x128xf32>
    %21 = vector.broadcast %12 : vector<1x128xf32> to vector<8x128xf32>
    %22 = arith.addf %20, %21 : vector<8x128xf32>
    %cst_14 = arith.constant 0.000000e+00 : f32
    %23 = vector.broadcast %cst_14 : f32 to vector<8x128xf32>
    %24 = arith.maximumf %22, %23 : vector<8x128xf32>
    %25 = arith.truncf %24 : vector<8x128xf32> to vector<8x128xbf16>
    %cst_15 = arith.constant dense<0.000000e+00> : vector<8x128xf32>
    %26 = tpu.matmul %25, %11, %cst_15 {dimension_numbers = #tpu.dot_dimension_numbers<[1], [0], [0], [1], [0, 0, 1, 1], [], []>} : vector<8x128xbf16>, vector<128x128xbf16>, vector<8x128xf32> -> vector<8x128xf32>
    %27 = vector.broadcast %12 : vector<1x128xf32> to vector<8x128xf32>
    %28 = arith.addf %26, %27 : vector<8x128xf32>
    %cst_16 = arith.constant 0.000000e+00 : f32
    %29 = vector.broadcast %cst_16 : f32 to vector<8x128xf32>
    %30 = arith.maximumf %28, %29 : vector<8x128xf32>
    %31 = arith.truncf %30 : vector<8x128xf32> to vector<8x128xbf16>
    %c0_17 = arith.constant 0 : index
    %c0_18 = arith.constant 0 : index
    %32 = vector.load %arg6[%c0_17, %c0_18] : memref<128x128xbf16, #tpu.memory_space<vmem>>, vector<128x128xbf16>
    %cst_19 = arith.constant dense<0.000000e+00> : vector<8x128xf32>
    %33 = tpu.matmul %31, %32, %cst_19 {dimension_numbers = #tpu.dot_dimension_numbers<[1], [0], [0], [1], [0, 0, 1, 1], [], []>} : vector<8x128xbf16>, vector<128x128xbf16>, vector<8x128xf32> -> vector<8x128xf32>
    %c0_20 = arith.constant 0 : index
    %c0_21 = arith.constant 0 : index
    %34 = vector.load %arg7[%c0_20, %c0_21] : memref<1x128xf32, #tpu.memory_space<vmem>>, vector<1x128xf32>
    %35 = vector.broadcast %34 : vector<1x128xf32> to vector<8x128xf32>
    %36 = arith.addf %33, %35 : vector<8x128xf32>
    %37 = vector.extract_strided_slice %36 {offsets = [0, 0], sizes = [8, 8], strides = [1, 1]} : vector<8x128xf32> to vector<8x8xf32>
    %c0_22 = arith.constant 0 : index
    %c0_23 = arith.constant 0 : index
    %38 = vector.load %arg8[%c0_22, %c0_23] : memref<8x8xf32, #tpu.memory_space<vmem>>, vector<8x8xf32>
    tpu.vector_store %arg8[%c0_22, %c0_23], %37 {strides = array<i32>} : memref<8x8xf32, #tpu.memory_space<vmem>>, vector<8x8xf32>,
    return
  }
  func.func @transform_0(%arg0: i32) -> (i32, i32) {
    %c0_i32 = arith.constant 0 : i32
    %c0_i32_0 = arith.constant 0 : i32
    return %arg0, %c0_i32 : i32, i32
  }
  func.func @transform_1(%arg0: i32) -> (i32, i32) {
    %c0_i32 = arith.constant 0 : i32
    %c0_i32_0 = arith.constant 0 : i32
    %c0_i32_1 = arith.constant 0 : i32
    return %c0_i32, %c0_i32_0 : i32, i32
  }
  func.func @transform_2(%arg0: i32) -> (i32, i32) {
    %c0_i32 = arith.constant 0 : i32
    %c0_i32_0 = arith.constant 0 : i32
    %c0_i32_1 = arith.constant 0 : i32
    return %c0_i32, %c0_i32_0 : i32, i32
  }
  func.func @transform_3(%arg0: i32) -> (i32, i32) {
    %c0_i32 = arith.constant 0 : i32
    %c0_i32_0 = arith.constant 0 : i32
    %c0_i32_1 = arith.constant 0 : i32
    return %c0_i32, %c0_i32_0 : i32, i32
  }
  func.func @transform_4(%arg0: i32) -> (i32, i32) {
    %c0_i32 = arith.constant 0 : i32
    %c0_i32_0 = arith.constant 0 : i32
    %c0_i32_1 = arith.constant 0 : i32
    return %c0_i32, %c0_i32_0 : i32, i32
  }
  func.func @transform_5(%arg0: i32) -> (i32, i32) {
    %c0_i32 = arith.constant 0 : i32
    %c0_i32_0 = arith.constant 0 : i32
    %c0_i32_1 = arith.constant 0 : i32
    return %c0_i32, %c0_i32_0 : i32, i32
  }
  func.func @transform_6(%arg0: i32) -> (i32, i32) {
    %c0_i32 = arith.constant 0 : i32
    %c0_i32_0 = arith.constant 0 : i32
    %c0_i32_1 = arith.constant 0 : i32
    return %c0_i32, %c0_i32_0 : i32, i32
  }
  func.func @transform_7(%arg0: i32) -> (i32, i32) {
    %c0_i32 = arith.constant 0 : i32
    %c0_i32_0 = arith.constant 0 : i32
    return %arg0, %c0_i32 : i32, i32
  }
}

</mosaic_0001>

<bundles_post_ra>
// kernel: tpu_custom_call.1
= control target key start
LH: loop header
LB: loop body
LE: loop exit
PB: predicated region body
PF: predicated region fallthrough
CT: control target
= control target key end

     0   :  { %12 = vsyncpa [#allocation3], 0  ;;  %s994_s0 = inlined_call_operand.hbm [shape: f32[8,16], index: 0, kind: input, shape index: {}]   ;;  %s995_s1 = inlined_call_operand.hbm [shape: bf16[128,128], index: 1, kind: input, shape index: {}]   ;;  %s996_s2 = inlined_call_operand.vmem [shape: f32[1,128], index: 2, kind: input, shape index: {}]   ;;  %s997_s3 = inlined_call_operand.hbm [shape: bf16[128,128], index: 3, kind: input, shape index: {}]   ;;  %s998_s4 = inlined_call_operand.vmem [shape: f32[1,128], index: 4, kind: input, shape index: {}]   ;;  %s999_s5 = inlined_call_operand.hbm [shape: bf16[128,128], index: 5, kind: input, shape index: {}]   ;;  %s1000_s6 = inlined_call_operand.vmem [shape: f32[1,128], index: 6, kind: input, shape index: {}]   ;;  %s1001_s7 = inlined_call_operand.hbm [shape: f32[8,8], index: 7, kind: output, shape index: {}]  }
   0x1   :  { %13 = vsyncpa [#allocation6], 0 }
   0x2   :  { %14 = vsyncpa [#allocation9], 0 }
   0x3   :  { %15 = vsyncpa [#allocation4], 0  ;;  %s842_s24 = smov [#allocation5]  }
   0x4   :  { %s31_s25 = sshll.u32 %s842_s24, 4  ;;  %s32_s25 = int_to_ptr.vmem [resolvable:$true] %s31_s25 }
   0x5   :  { %s742_s26 = scalar_lea.vmem %s32_s25, 1024  ;;  %p747_p1 = scmp.lt.s32.totalorder %s32_s25, %s32_s25 }
   0x6   :  { %p743_p0 = scmp.ne.s32.totalorder %s32_s25, %s742_s26  ;;  %p748_p2 = scmp.lt.s32.totalorder %s742_s26, %s742_s26 }
   0x8   :  { %p749_p3 = por %p748_p2, %p747_p1 }
   0xa   :  { %p750_p4 = pnand %p749_p3, %p743_p0 }
   0xc   :  { %753 = shalt.err (!%p750_p4)
}
   0xd   :  { %s843_s27 = smov 64   ;;  %s844_s28 = smov 4  }
   0xe   :  { %37 = dma.hbm_to_vmem [thread:$0]  %s995_s1, 1024, %s32_s25, [#allocation6], %s843_s27, %s843_s27, %s844_s28  }
   0xf   :  { %s845_s8 = smov [#allocation2]   ;;  %s846_s10 = smov [#allocation7]  }
  0x10   :  { %s22_s9 = sshll.u32 %s845_s8, 4  ;;  %s45_s11 = sshll.u32 %s846_s10, 4  ;;  %s23_s9 = int_to_ptr.vmem [resolvable:$true] %s22_s9  ;;  %s46_s11 = int_to_ptr.vmem [resolvable:$true] %s45_s11 }
  0x11   :  { %s762_s12 = scalar_lea.vmem %s23_s9, 128  ;;  %p767_p6 = scmp.lt.s32.totalorder %s23_s9, %s23_s9 }
  0x12   :  { %p763_p5 = scmp.ne.s32.totalorder %s23_s9, %s762_s12  ;;  %p768_p7 = scmp.lt.s32.totalorder %s762_s12, %s762_s12 }
  0x14   :  { %p769_p8 = por %p768_p7, %p767_p6 }
  0x16   :  { %p770_p9 = pnand %p769_p8, %p763_p5 }
  0x18   :  { %773 = shalt.err (!%p770_p9)
}
  0x19   :  { %25 = dma.hbm_to_vmem [thread:$0]  %s994_s0, 128, %s23_s9, [#allocation3]  }
  0x1a   :  { %s782_s15 = scalar_lea.vmem %s46_s11, 1024  ;;  %p787_p11 = scmp.lt.s32.totalorder %s46_s11, %s46_s11 }
  0x1b   :  { %p783_p10 = scmp.ne.s32.totalorder %s46_s11, %s782_s15  ;;  %p788_p12 = scmp.lt.s32.totalorder %s782_s15, %s782_s15 }
  0x1d   :  { %p789_p13 = por %p788_p12, %p787_p11 }
  0x1f   :  { %p790_p0 = pnand %p789_p13, %p783_p10 }
  0x21   :  { %793 = shalt.err (!%p790_p0)
}
  0x22   :  { %51 = dma.hbm_to_vmem [thread:$0]  %s997_s3, 1024, %s46_s11, [#allocation6], %s843_s27, %s843_s27, %s844_s28  }
  0x23   :  { %s847_s17 = smov [#allocation8]  }
  0x24   :  { %s59_s18 = sshll.u32 %s847_s17, 4  ;;  %s60_s18 = int_to_ptr.vmem [resolvable:$true] %s59_s18 }
  0x25   :  { %s802_s19 = scalar_lea.vmem %s60_s18, 1024  ;;  %p807_p2 = scmp.lt.s32.totalorder %s60_s18, %s60_s18 }
  0x26   :  { %p803_p1 = scmp.ne.s32.totalorder %s60_s18, %s802_s19  ;;  %p808_p3 = scmp.lt.s32.totalorder %s802_s19, %s802_s19 }
  0x28   :  { %p809_p4 = por %p808_p3, %p807_p2 }
  0x2a   :  { %p810_p5 = pnand %p809_p4, %p803_p1 }
  0x2c   :  { %813 = shalt.err (!%p810_p5)
}
  0x2d   :  { %65 = dma.hbm_to_vmem [thread:$0]  %s999_s5, 1024, %s60_s18, [#allocation9], %s843_s27, %s843_s27, %s844_s28  }
  0x2e   :  { %834 = dma.done.wait [#allocation3], 128  }
  0x2f   :  { %835 = vsyncadd [#allocation3], 4294967168 }
  0x30   :  { %836 = dma.done.wait [#allocation6], 2048  }
  0x31   :  { %837 = vsyncadd [#allocation6], 4294965248 }
  0x32   :  { %838 = dma.done.wait [#allocation9], 1024  }
  0x33   :  { %839 = vsyncadd [#allocation9], 4294966272  ;;  %v848_v0 = vmov 0.0   ;;  %vm849_vm0 = vmmov 0   ;;  %v710_v1 = vld [vmem:[#allocation5 + $0x38] sm:$0xff]   ;;  %v711_v2 = vld [vmem:[#allocation5 + $0x30] sm:$0xff]  }
  0x34   :  { %601 = vmatprep.subr.bf16.mxu0 %v848_v0  ;;  %617 = vmatprep.mubr.msk.bf16.mxu0 %vm849_vm0, %v848_v0  ;;  %v712_v3 = vld [vmem:[#allocation5 + $0x28] sm:$0xff]   ;;  %v920_v4 = vld [vmem:[#allocation7 + $0x38] sm:$0xff]   ;;  %v713_v5 = vld [vmem:[#allocation5 + $0x20] sm:$0xff]   ;;  %vm83_vm1 = vcmask 130048   ;;  %s850_s23 = smov [#allocation10]   ;;  %vm509_vm2 = vcmask 64512  }
  0x35   :  { %621 = vmatprep.subr.bf16.mxu1 %v848_v0  ;;  %637 = vmatprep.mubr.msk.bf16.mxu1 %vm849_vm0, %v848_v0  ;;  %v924_v6 = vld [vmem:[#allocation7 + $0x30] sm:$0xff]   ;;  %v714_v7 = vld [vmem:[#allocation5 + $0x18] sm:$0xff]   ;;  %v927_v8 = vld [vmem:[#allocation7 + $0x28] sm:$0xff]   ;;  %s517_s24 = sshll.u32 %s850_s23, 4  ;;  %s518_s24 = int_to_ptr.vmem [resolvable:$true] %s517_s24 }
  0x36   :  { %602 = vmatpush3.bf16.msra.mxu0 %v710_v1  ;;  %622 = vmatpush3.bf16.msra.mxu1 %v920_v4  ;;  %v715_v9 = vld [vmem:[#allocation5 + $0x10] sm:$0xff]   ;;  %v932_v10 = vld [vmem:[#allocation7 + $0x20] sm:$0xff]   ;;  %v716_v11 = vld [vmem:[#allocation5 + $0x8] sm:$0xff]   ;;  %s814_s25 = scalar_lea.vmem %s518_s24, 128  ;;  %p819_p7 = scmp.lt.s32.totalorder %s518_s24, %s518_s24 }
  0x37   :  { %603 = vmatprep.subr.bf16.mxu0 %v848_v0  ;;  %623 = vmatprep.subr.bf16.mxu1 %v848_v0  ;;  %v722_v12 = vld [vmem:[#allocation7 + $0x18] sm:$0xff]   ;;  %v717_v13 = vld [vmem:[#allocation5] sm:$0xff]   ;;  %v723_v15 = vld [vmem:[#allocation7 + $0x10] sm:$0xff]   ;;  %p815_p6 = scmp.ne.s32.totalorder %s518_s24, %s814_s25  ;;  %p820_p8 = scmp.lt.s32.totalorder %s814_s25, %s814_s25 }
  0x38   :  { %v81_v14 = vld [vmem:[#allocation2] sm:$0xff]  ;;  %v724_v17 = vld [vmem:[#allocation7 + $0x8] sm:$0xff]   ;;  %v725_v18 = vld [vmem:[#allocation7] sm:$0xff]  }
  0x39   :  { %v82_v16 = vpack.c.bf16 %v81_v14, %v81_v14  ;;  %v528_v19 = vld [vmem:[%s996_s2] ss:$0 sm:$0xff]  ;;  %v727_v36 = vld [vmem:[#allocation8 + $0x30] sm:$0xff]   ;;  %v728_v37 = vld [vmem:[#allocation8 + $0x28] sm:$0xff]   ;;  %p821_p9 = por %p820_p8, %p819_p7 }
  0x3a   :  { %604 = vmatpush3.bf16.msra.mxu0 %v711_v2  ;;  %624 = vmatpush3.bf16.msra.mxu1 %v924_v6  ;;  %v538_v27 = vld [vmem:[%s998_s4] ss:$0 sm:$0xff]  ;;  %v729_v38 = vld [vmem:[#allocation8 + $0x20] sm:$0xff]   ;;  %v731_v40 = vld [vmem:[#allocation8 + $0x10] sm:$0xff]  }
  0x3b   :  { %605 = vmatprep.subr.bf16.mxu0 %v848_v0  ;;  %625 = vmatprep.subr.bf16.mxu1 %v848_v0  ;;  %v726_v35 = vld [vmem:[#allocation8 + $0x38] sm:$0xff]   ;;  %v732_v48 = vld [vmem:[#allocation8 + $0x8] sm:$0xff]   ;;  %v733_v49 = vld [vmem:[#allocation8] sm:$0xff]   ;;  %p822_p10 = pnand %p821_p9, %p815_p6 }
  0x3c   :  { %v730_v39 = vld [vmem:[#allocation8 + $0x18] sm:$0xff]  }
  0x3d   :  { %v547_v57 = vld [vmem:[%s1000_s6] ss:$0 sm:$0xff] }
  0x3e   :  { %606 = vmatpush3.bf16.msra.mxu0 %v712_v3  ;;  %626 = vmatpush3.bf16.msra.mxu1 %v927_v8 }
  0x3f   :  { %607 = vmatprep.subr.bf16.mxu0 %v848_v0  ;;  %627 = vmatprep.subr.bf16.mxu1 %v848_v0 }
  0x42   :  { %608 = vmatpush3.bf16.msra.mxu0 %v713_v5  ;;  %628 = vmatpush3.bf16.msra.mxu1 %v932_v10 }
  0x43   :  { %609 = vmatprep.subr.bf16.mxu0 %v848_v0  ;;  %629 = vmatprep.subr.bf16.mxu1 %v848_v0 }
  0x46   :  { %610 = vmatpush3.bf16.msra.mxu0 %v714_v7  ;;  %630 = vmatpush3.bf16.msra.mxu1 %v722_v12 }
  0x47   :  { %611 = vmatprep.subr.bf16.mxu0 %v848_v0  ;;  %631 = vmatprep.subr.bf16.mxu1 %v848_v0 }
  0x4a   :  { %612 = vmatpush3.bf16.msra.mxu0 %v715_v9  ;;  %632 = vmatpush3.bf16.msra.mxu1 %v723_v15 }
  0x4b   :  { %613 = vmatprep.subr.bf16.mxu0 %v848_v0  ;;  %633 = vmatprep.subr.bf16.mxu1 %v848_v0 }
  0x4e   :  { %614 = vmatpush3.bf16.msra.mxu0 %v716_v11  ;;  %634 = vmatpush3.bf16.msra.mxu1 %v724_v17 }
  0x4f   :  { %615 = vmatprep.subr.bf16.mxu0 %v848_v0  ;;  %635 = vmatprep.subr.bf16.mxu1 %v848_v0 }
  0x52   :  { %616 = vmatpush3.bf16.msra.mxu0 %v717_v13  ;;  %636 = vmatpush3.bf16.msra.mxu1 %v725_v18 }
  0x53   :  { %641 = vmatprep.subr.bf16.mxu0 %v848_v0  ;;  %661 = vmatprep.subr.bf16.mxu1 %v848_v0 }
  0x55   :  { %618 = vmatmul.mubr.msk.bf16.vlgmr.msra.gmra.mxu0 %vm83_vm1, %v82_v16 }
  0x56   :  { %642 = vmatpush3.bf16.msra.mxu0 %v920_v4  ;;  %657 = vmatprep.mubr.msk.bf16.mxu0 %vm849_vm0, %v848_v0 }
  0x57   :  { %643 = vmatprep.subr.bf16.mxu0 %v848_v0 }
  0x5a   :  { %644 = vmatpush3.bf16.msra.mxu0 %v924_v6 }
  0x5b   :  { %645 = vmatprep.subr.bf16.mxu0 %v848_v0 }
  0x5e   :  { %646 = vmatpush3.bf16.msra.mxu0 %v927_v8 }
  0x5f   :  { %647 = vmatprep.subr.bf16.mxu0 %v848_v0 }
  0x62   :  { %648 = vmatpush3.bf16.msra.mxu0 %v932_v10 }
  0x63   :  { %649 = vmatprep.subr.bf16.mxu0 %v848_v0 }
  0x66   :  { %650 = vmatpush3.bf16.msra.mxu0 %v722_v12 }
  0x67   :  { %651 = vmatprep.subr.bf16.mxu0 %v848_v0 }
  0x6a   :  { %652 = vmatpush3.bf16.msra.mxu0 %v723_v15 }
  0x6b   :  { %653 = vmatprep.subr.bf16.mxu0 %v848_v0 }
  0x6e   :  { %654 = vmatpush3.bf16.msra.mxu0 %v724_v17 }
  0x6f   :  { %655 = vmatprep.subr.bf16.mxu0 %v848_v0 }
  0x72   :  { %656 = vmatpush3.bf16.msra.mxu0 %v725_v18 }
  0x73   :  { %681 = vmatprep.subr.bf16.mxu0 %v848_v0 }
 0x115   :  { %v193_v20 = vpop.f32.mrf.mxu0 }
 0x116   :  { %v194_v21 = vadd.f32 %v528_v19, %v193_v20 }
 0x117   :  { %v619_v22 = vpop.f32.mrf.mxu0 }
 0x118   :  { %v199_v23 = vmax.f32 %v194_v21, 0.0 }
 0x119   :  { %v196_v24 = vpop.f32.mrf.mxu0 }
 0x11a   :  { %v217_v25 = vpack.c.bf16 %v199_v23, %v199_v23 }
 0x11b   :  { %v620_v26 = vpop.f32.mrf.mxu0 }
 0x11c   :  { %638 = vmatmul.mubr.bf16.vlgmr.msra.gmra.mxu1 %v217_v25 }
 0x11d   :  { %662 = vmatpush3.bf16.msra.mxu1 %v920_v4  ;;  %677 = vmatprep.mubr.msk.bf16.mxu1 %vm849_vm0, %v848_v0 }
 0x11e   :  { %663 = vmatprep.subr.bf16.mxu1 %v848_v0 }
 0x121   :  { %664 = vmatpush3.bf16.msra.mxu1 %v924_v6 }
 0x122   :  { %665 = vmatprep.subr.bf16.mxu1 %v848_v0 }
 0x125   :  { %666 = vmatpush3.bf16.msra.mxu1 %v927_v8 }
 0x126   :  { %667 = vmatprep.subr.bf16.mxu1 %v848_v0 }
 0x129   :  { %668 = vmatpush3.bf16.msra.mxu1 %v932_v10 }
 0x12a   :  { %669 = vmatprep.subr.bf16.mxu1 %v848_v0 }
 0x12d   :  { %670 = vmatpush3.bf16.msra.mxu1 %v722_v12 }
 0x12e   :  { %671 = vmatprep.subr.bf16.mxu1 %v848_v0 }
 0x131   :  { %672 = vmatpush3.bf16.msra.mxu1 %v723_v15 }
 0x132   :  { %673 = vmatprep.subr.bf16.mxu1 %v848_v0 }
 0x135   :  { %674 = vmatpush3.bf16.msra.mxu1 %v724_v17 }
 0x136   :  { %675 = vmatprep.subr.bf16.mxu1 %v848_v0 }
 0x139   :  { %676 = vmatpush3.bf16.msra.mxu1 %v725_v18 }
 0x1dc   :  { %v306_v28 = vpop.f32.mrf.mxu1 }
 0x1dd   :  { %v307_v29 = vadd.f32 %v538_v27, %v306_v28 }
 0x1de   :  { %v639_v30 = vpop.f32.mrf.mxu1 }
 0x1df   :  { %v312_v31 = vmax.f32 %v307_v29, 0.0 }
 0x1e0   :  { %v309_v32 = vpop.f32.mrf.mxu1 }
 0x1e1   :  { %v313_v33 = vpack.c.bf16 %v312_v31, %v312_v31 }
 0x1e2   :  { %v640_v34 = vpop.f32.mrf.mxu1 }
 0x1e3   :  { %658 = vmatmul.mubr.bf16.vlgmr.msra.gmra.mxu0 %v313_v33 }
 0x1e4   :  { %697 = vmatprep.mubr.msk.bf16.mxu0 %vm849_vm0, %v848_v0  ;;  %682 = vmatpush3.bf16.msra.mxu0 %v726_v35 }
 0x1e5   :  { %683 = vmatprep.subr.bf16.mxu0 %v848_v0 }
 0x1e8   :  { %684 = vmatpush3.bf16.msra.mxu0 %v727_v36 }
 0x1e9   :  { %685 = vmatprep.subr.bf16.mxu0 %v848_v0 }
 0x1ec   :  { %686 = vmatpush3.bf16.msra.mxu0 %v728_v37 }
 0x1ed   :  { %687 = vmatprep.subr.bf16.mxu0 %v848_v0 }
 0x1f0   :  { %688 = vmatpush3.bf16.msra.mxu0 %v729_v38 }
 0x1f1   :  { %689 = vmatprep.subr.bf16.mxu0 %v848_v0 }
 0x1f4   :  { %690 = vmatpush3.bf16.msra.mxu0 %v730_v39 }
 0x1f5   :  { %691 = vmatprep.subr.bf16.mxu0 %v848_v0 }
 0x1f8   :  { %692 = vmatpush3.bf16.msra.mxu0 %v731_v40 }
 0x1f9   :  { %693 = vmatprep.subr.bf16.mxu0 %v848_v0 }
 0x1fc   :  { %694 = vmatpush3.bf16.msra.mxu0 %v732_v48 }
 0x1fd   :  { %695 = vmatprep.subr.bf16.mxu0 %v848_v0 }
 0x200   :  { %696 = vmatpush3.bf16.msra.mxu0 %v733_v49 }
 0x2a3   :  { %v348_v41 = vpop.f32.mrf.mxu0 }
 0x2a4   :  { %v349_v42 = vadd.f32 %v538_v27, %v348_v41 }
 0x2a5   :  { %v659_v43 = vpop.f32.mrf.mxu0 }
 0x2a6   :  { %v354_v44 = vmax.f32 %v349_v42, 0.0 }
 0x2a7   :  { %v351_v45 = vpop.f32.mrf.mxu0 }
 0x2a8   :  { %v355_v46 = vpack.c.bf16 %v354_v44, %v354_v44 }
 0x2a9   :  { %v660_v47 = vpop.f32.mrf.mxu0 }
 0x2aa   :  { %678 = vmatmul.mubr.bf16.vlgmr.msra.gmra.mxu1 %v355_v46 }
 0x36a   :  { %v390_v50 = vpop.f32.mrf.mxu1 }
 0x36b   :  { %v391_v51 = vadd.f32 %v538_v27, %v390_v50 }
 0x36c   :  { %v679_v52 = vpop.f32.mrf.mxu1 }
 0x36d   :  { %v396_v53 = vmax.f32 %v391_v51, 0.0 }
 0x36e   :  { %v393_v54 = vpop.f32.mrf.mxu1 }
 0x36f   :  { %v397_v55 = vpack.c.bf16 %v396_v53, %v396_v53 }
 0x370   :  { %v680_v56 = vpop.f32.mrf.mxu1 }
 0x371   :  { %698 = vmatmul.mubr.bf16.vlgmr.msra.gmra.mxu0 %v397_v55 }
 0x431   :  { %v503_v58 = vpop.f32.mrf.mxu0 }
 0x432   :  { %v504_v59 = vadd.f32 %v547_v57, %v503_v58 }
 0x433   :  { %v699_v60 = vpop.f32.mrf.mxu0 }
 0x434   :  { %510 = vst.msk [vmem:[#allocation10] sm:$0xff] %vm509_vm2, %v504_v59 }
 0x435   :  { %v506_v61 = vpop.f32.mrf.mxu0 }
 0x436   :  { %825 = shalt.err (!%p822_p10)
}
 0x437   :  { %520 = dma.vmem_to_hbm [thread:$0]  %s518_s24, 128, %s1001_s7, [#allocation4]   ;;  %v700_v62 = vpop.f32.mrf.mxu0 }
 0x438   :  { %840 = dma.done.wait [#allocation4], 128  }
 0x439   :  { %841 = vsyncadd [#allocation4], 4294967168 }
 0x43a   :  { %524 = vsyncpa [#allocation3], 1 }
 0x43b   :  { %525 = vsyncpa [#allocation6], 1 }
 0x43c   :  { %526 = vsyncpa [#allocation9], 1 }
 0x43d   :  { %527 = vsyncpa [#allocation4], 1 }

</bundles_post_ra>
